<compile_context>
chip_gen: v7x
topology: tpu7x:2x2x1
jax: 0.10.0
libtpu: 0.0.40
codegen_flags: <defaults>
</compile_context>

<pallas_src>
import math

import jax
import jax.numpy as jnp
from jax.experimental import pallas as pl
from jax.experimental.pallas import tpu as pltpu

_LANE = 128
_PRELU_ALPHA_DEFAULT = 0.25      # torch.nn.PReLU() default init


def _round_up(x, m):
    return (x + m - 1) // m * m


def _vmem_budget_bytes():
    """~85% of the physical per-core VMEM (v5e/v6e: 128 MiB, v7x: 64 MiB)."""
    cap = 64 * 1024 * 1024                         # safe lower bound (v7x)
    try:
        cap = int(pltpu.get_tpu_info().vmem_capacity_bytes)
    except Exception:
        pass
    return int(0.85 * cap)


# --------------------------------------------------------------------------------------
# Variant A: adjacency resident in VMEM, grid = (num_layers,)
# --------------------------------------------------------------------------------------
def _gcn_resident_kernel(x_ref, adj_hbm, w_ref, b_ref, alpha_ref, o_ref,
                         adj_vmem, t_scr, adj_sem):
    l = pl.program_id(0)
    h_pad = o_ref.shape[1]

    @pl.when(l == 0)
    def _():
        # One-time adjacency copy into a SINGLE VMEM buffer (no pipeline double-buffer).
        cp = pltpu.make_async_copy(adj_hbm, adj_vmem, adj_sem)
        cp.start()
        cp.wait()
        # Layer-0 feature transform straight from x (d_pad-wide contraction).
        t_scr[...] = jnp.dot(x_ref[...], w_ref[0],
                             preferred_element_type=jnp.float32).astype(jnp.bfloat16)

    @pl.when(l > 0)
    def _():
        # Layers >= 1: h lives in o_ref (resident output block); only the first h_pad
        # rows of the padded W_l are non-zero, so contract h_pad (saves MXU work).
        t_scr[...] = jnp.dot(o_ref[...].astype(jnp.bfloat16), w_ref[0][:h_pad, :],
                             preferred_element_type=jnp.float32).astype(jnp.bfloat16)

    out = jnp.dot(adj_vmem[...], t_scr[...], preferred_element_type=jnp.float32)
    out = out + b_ref[0]
    alpha = alpha_ref[l]                             # learned PReLU slope (SMEM scalar)
    out = jnp.where(out > 0.0, out, alpha * out)

    @pl.when(l == 0)
    def _():
        o_ref[...] = out

    @pl.when(l > 0)
    def _():
        o_ref[...] = out + o_ref[...]                # residual for layers > 0


# --------------------------------------------------------------------------------------
# Variant B: adjacency streamed in bf16 tiles, grid = (layer, row tile, reduction tile)
# --------------------------------------------------------------------------------------
def _gcn_streamed_kernel(x_ref, adj_ref, w_ref, b_ref, alpha_ref, o_ref,
                         h_scr, t_scr):
    l = pl.program_id(0)
    r = pl.program_id(1)
    k = pl.program_id(2)
    last_k = pl.num_programs(2) - 1

    tm, h_pad = o_ref.shape
    tk = adj_ref.shape[1]
    roff = pl.multiple_of(r * tm, tm)
    koff = pl.multiple_of(k * tk, tk)

    # Chunked per-layer feature transform: t[k_tile] = h[k_tile] @ W_l, computed at r==0
    # just before the adj tile that consumes it -> overlaps with adj streaming and never
    # materialises a full (n_pad, d_pad) temporary.
    @pl.when(jnp.logical_and(r == 0, l == 0))
    def _():
        t_scr[pl.ds(koff, tk), :] = jnp.dot(
            x_ref[pl.ds(koff, tk), :], w_ref[0],
            preferred_element_type=jnp.float32).astype(jnp.bfloat16)

    @pl.when(jnp.logical_and(r == 0, l > 0))
    def _():
        t_scr[pl.ds(koff, tk), :] = jnp.dot(
            h_scr[pl.ds(koff, tk), :].astype(jnp.bfloat16), w_ref[0][:h_pad, :],
            preferred_element_type=jnp.float32).astype(jnp.bfloat16)

    # o_ref is f32 and revisited across k: use it directly as the reduction accumulator.
    @pl.when(k == 0)
    def _():
        o_ref[...] = jnp.zeros_like(o_ref)

    o_ref[...] += jnp.dot(adj_ref[...], t_scr[pl.ds(koff, tk), :],
                          preferred_element_type=jnp.float32)

    # Epilogue at the last reduction step: bias + PReLU (+ residual), update resident h.
    @pl.when(jnp.logical_and(k == last_k, l == 0))
    def _():
        out = o_ref[...] + b_ref[0]
        out = jnp.where(out > 0.0, out, alpha_ref[l] * out)
        h_scr[pl.ds(roff, tm), :] = out
        o_ref[...] = out

    @pl.when(jnp.logical_and(k == last_k, l > 0))
    def _():
        out = o_ref[...] + b_ref[0]
        out = jnp.where(out > 0.0, out, alpha_ref[l] * out)
        out = out + h_scr[pl.ds(roff, tm), :]
        h_scr[pl.ds(roff, tm), :] = out
        o_ref[...] = out


# --------------------------------------------------------------------------------------
# Wrapper
# --------------------------------------------------------------------------------------
def _pad_inputs(x, adj, weights, biases, alphas, n_pad, d_pad, h_pad):
    n, f = x.shape
    h_dim = weights[0].shape[1]
    num_layers = len(weights)
    x_p = jnp.zeros((n_pad, d_pad), jnp.bfloat16).at[:n, :f].set(x.astype(jnp.bfloat16))
    adj_p = jnp.zeros((n_pad, n_pad), jnp.bfloat16).at[:n, :n].set(adj.astype(jnp.bfloat16))
    w_p = jnp.zeros((num_layers, d_pad, h_pad), jnp.bfloat16)
    b_p = jnp.zeros((num_layers, 1, h_pad), jnp.float32)
    for i, (w, b) in enumerate(zip(weights, biases)):
        w_p = w_p.at[i, : w.shape[0], :h_dim].set(w.astype(jnp.bfloat16))
        b_p = b_p.at[i, 0, :h_dim].set(b.astype(jnp.float32))
    alpha_p = jnp.asarray(alphas, dtype=jnp.float32).reshape(num_layers)
    return x_p, adj_p, w_p, b_p, alpha_p


def gcn_layers_forward(seq, adj, weights, biases, alphas, *,
                       sparse=False, LP=False,
                       adj_resident=None, tile_rows=None, tile_cols=None):
    """Pallas implementation of GcnLayers.forward (LP=False path), all layers fused."""
    del sparse  # TODO(synk): torch.spmm sparse path treated as a dense (N, N) adjacency.
    assert not LP, "LP=True (BatchNorm1d + Dropout) path not implemented"

    x = jnp.squeeze(seq, axis=0)                               # (N, F)
    n, f = x.shape
    h_dim = weights[0].shape[1]
    num_layers = len(weights)
    assert weights[0].shape == (f, h_dim)
    for w in weights[1:]:
        assert w.shape == (h_dim, h_dim), "residual layers require hidden -> hidden"

    h_pad = _round_up(h_dim, _LANE)
    d_pad = _round_up(max(f, h_dim), _LANE)
    vmem_budget = _vmem_budget_bytes()

    # ---- adj-residency feasibility (single-buffered adj + resident x/h/t + dot temps) ----
    n_pad_res = _round_up(n, _LANE)
    resident_bytes = (
        n_pad_res * n_pad_res * 2                       # adj (bf16, single buffer)
        + 2 * n_pad_res * d_pad * 2                     # x (double-buffered resident block)
        + 2 * n_pad_res * h_pad * 4                     # output block == resident h (f32)
        + n_pad_res * h_pad * 2                         # t scratch (bf16)
        + 2 * d_pad * h_pad * 2 + 2 * 4 * h_pad         # W_l / b_l (double-buffered)
        + 3 * n_pad_res * h_pad * 4                     # dot temporaries / casts
    )
    if adj_resident is None:
        adj_resident = resident_bytes <= vmem_budget

    if adj_resident:
        # -------- variant A: everything in VMEM, one grid step per layer --------
        n_pad = n_pad_res
        x_p, adj_p, w_p, b_p, alpha_p = _pad_inputs(x, adj, weights, biases, alphas,
                                                    n_pad, d_pad, h_pad)
        vmem_limit = int(min(vmem_budget, max(32 * 1024 * 1024, int(1.2 * resident_bytes))))

        out = pl.pallas_call(
            _gcn_resident_kernel,
            out_shape=jax.ShapeDtypeStruct((n_pad, h_pad), jnp.float32),
            grid_spec=pltpu.PrefetchScalarGridSpec(
                num_scalar_prefetch=0,
                grid=(num_layers,),
                in_specs=[
                    pl.BlockSpec((n_pad, d_pad), lambda l: (0, 0)),        # x (resident)
                    pl.BlockSpec(memory_space=pl.ANY),                     # adj (HBM, manual DMA)
                    pl.BlockSpec((1, d_pad, h_pad), lambda l: (l, 0, 0)),  # W_l
                    pl.BlockSpec((1, 1, h_pad), lambda l: (l, 0, 0)),      # b_l
                    pl.BlockSpec(memory_space=pltpu.MemorySpace.SMEM),     # PReLU alphas
                ],
                out_specs=pl.BlockSpec((n_pad, h_pad), lambda l: (0, 0)),  # resident h / out
                scratch_shapes=[
                    pltpu.VMEM((n_pad, n_pad), jnp.bfloat16),              # adj (single buffer)
                    pltpu.VMEM((n_pad, h_pad), jnp.bfloat16),              # t = h @ W_l
                    pltpu.SemaphoreType.DMA(()),
                ],
            ),
            compiler_params=pltpu.CompilerParams(
                dimension_semantics=("arbitrary",),    # layer l+1 reads layer l's output
                vmem_limit_bytes=vmem_limit,
            ),
        )(x_p, adj_p, w_p, b_p, alpha_p)
    else:
        # -------- variant B: stream adj tiles (default 512x1024 bf16 = 1 MiB) --------
        if tile_rows is None:
            tile_rows = 512
        if tile_cols is None:
            tile_cols = 1024
        assert tile_rows % _LANE == 0 and tile_cols % _LANE == 0
        n_pad = _round_up(n, math.lcm(tile_rows, tile_cols))
        num_r, num_k = n_pad // tile_rows, n_pad // tile_cols

        x_p, adj_p, w_p, b_p, alpha_p = _pad_inputs(x, adj, weights, biases, alphas,
                                                    n_pad, d_pad, h_pad)
        stream_bytes = (
            2 * n_pad * d_pad * 2                      # x (resident, double-buffered)
            + n_pad * h_pad * 4                        # resident h scratch
            + n_pad * h_pad * 2                        # resident t scratch
            + 2 * tile_rows * tile_cols * 2            # adj tiles (double-buffered)
            + 2 * tile_rows * h_pad * 4                # output row tile / accumulator
            + 2 * d_pad * h_pad * 2 + 2 * 4 * h_pad    # W_l / b_l
            + 2 * max(tile_rows, tile_cols) * h_pad * 4  # dot temporaries
        )
        vmem_limit = int(min(vmem_budget, max(32 * 1024 * 1024, int(1.2 * stream_bytes))))

        out = pl.pallas_call(
            _gcn_streamed_kernel,
            out_shape=jax.ShapeDtypeStruct((n_pad, h_pad), jnp.float32),
            grid_spec=pltpu.PrefetchScalarGridSpec(
                num_scalar_prefetch=0,
                grid=(num_layers, num_r, num_k),
                in_specs=[
                    pl.BlockSpec((n_pad, d_pad), lambda l, r, k: (0, 0)),          # x (resident)
                    pl.BlockSpec((tile_rows, tile_cols), lambda l, r, k: (r, k)),  # adj (streamed)
                    pl.BlockSpec((1, d_pad, h_pad), lambda l, r, k: (l, 0, 0)),    # W_l
                    pl.BlockSpec((1, 1, h_pad), lambda l, r, k: (l, 0, 0)),        # b_l
                    pl.BlockSpec(memory_space=pltpu.MemorySpace.SMEM),             # alphas
                ],
                out_specs=pl.BlockSpec((tile_rows, h_pad), lambda l, r, k: (r, 0)),
                scratch_shapes=[
                    pltpu.VMEM((n_pad, h_pad), jnp.float32),    # h, resident across layers
                    pltpu.VMEM((n_pad, h_pad), jnp.bfloat16),   # t = h @ W_l, per layer
                ],
            ),
            compiler_params=pltpu.CompilerParams(
                # t chunks (computed at r==0) and the resident h couple all axes -> sequential.
                dimension_semantics=("arbitrary", "arbitrary", "arbitrary"),
                vmem_limit_bytes=vmem_limit,
            ),
        )(x_p, adj_p, w_p, b_p, alpha_p)

    return out[:n, :h_dim][None, ...]                           # (1, N, H)


# --------------------------------------------------------------------------------------
# Test harness
# --------------------------------------------------------------------------------------
def _init_params(key, n_in, n_h, num_layers):
    """Shapes mirror the PyTorch module (GCN: Linear no-bias, additive bias, PReLU)."""
    weights, biases, alphas = [], [], []
    for i in range(num_layers):
        key, kw, kb = jax.random.split(key, 3)
        fan_in = n_h if i else n_in
        bound = 1.0 / (fan_in ** 0.5)
        weights.append(jax.random.uniform(kw, (fan_in, n_h), jnp.float32, -bound, bound))
        # Module zero-inits bias / PReLU uses 0.25; use non-trivial values so the runtime
        # bias / per-layer-alpha paths are exercised.
        biases.append(0.1 * jax.random.normal(kb, (n_h,), jnp.float32))
        alphas.append(_PRELU_ALPHA_DEFAULT + 0.05 * i)
    return weights, biases, alphas


def _reference_forward(seq, adj, weights, biases, alphas):
    """Pure-JAX reference mirroring the kernel's bf16-matmul / f32-accumulate math."""
    h = jnp.squeeze(seq, axis=0).astype(jnp.float32)
    a16 = adj.astype(jnp.bfloat16)
    for i, (w, b, al) in enumerate(zip(weights, biases, alphas)):
        t = jnp.dot(h.astype(jnp.bfloat16), w.astype(jnp.bfloat16),
                    preferred_element_type=jnp.float32).astype(jnp.bfloat16)
        out = jnp.dot(a16, t, preferred_element_type=jnp.float32) + b[None, :]
        out = jnp.where(out > 0.0, out, al * out)
        h = out + h if i else out
    return h[None, ...]


def _run_case(key, n, n_in, n_h, num_layers, **kw):
    k_seq, k_adj, k_par = jax.random.split(key, 3)
    seq = jax.random.normal(k_seq, (1, n, n_in), dtype=jnp.float32)
    # symmetric, row-normalized dense adjacency with self loops
    a = jax.random.uniform(k_adj, (n, n), dtype=jnp.float32)
    a = (a + a.T) * 0.5 + jnp.eye(n, dtype=jnp.float32)
    adj = a / jnp.sum(a, axis=1, keepdims=True)
    weights, biases, alphas = _init_params(k_par, n_in, n_h, num_layers)

    out = gcn_layers_forward(seq, adj, weights, biases, alphas, sparse=False, LP=False, **kw)
    out = jax.block_until_ready(out)

    ref = _reference_forward(seq, adj, weights, biases, alphas)
    assert out.shape == (1, n, n_h), out.shape
    err = float(jnp.max(jnp.abs(out - ref)))
    assert jnp.allclose(out, ref, atol=2e-2, rtol=2e-2), f"mismatch vs reference: {err}"


if __name__ == "__main__":
    key = jax.random.PRNGKey(0)
    k1, k2, k3 = jax.random.split(key, 3)

    # adj-resident path (auto): small graph, feature dim != hidden dim (d_pad != h_pad).
    _run_case(k1, n=16, n_in=200, n_h=32, num_layers=3)
    # adj-resident path, single layer (no residual branch).
    _run_case(k2, n=100, n_in=48, n_h=48, num_layers=1)
    # adj-streamed path forced with small tiles (production default is 512x1024) to
    # exercise the chunked h@W, o_ref accumulation and per-tile epilogue on small shapes.
    _run_case(k3, n=384, n_in=192, n_h=32, num_layers=2,
              adj_resident=False, tile_rows=128, tile_cols=128)

    print("KERNEL_OK")
</pallas_src>

<mosaic_0001>
module attributes {stable_mosaic.version = 11 : i64} {
  func.func @_gcn_resident_kernel(%arg0: i32, %arg1: memref<128x256xbf16, #tpu.memory_space<vmem>>, %arg2: memref<128x128xbf16, #tpu.memory_space<any>>, %arg3: memref<1x256x128xbf16, #tpu.memory_space<vmem>>, %arg4: memref<1x1x128xf32, #tpu.memory_space<vmem>>, %arg5: memref<3xf32, #tpu.memory_space<smem>>, %arg6: memref<128x128xf32, #tpu.memory_space<vmem>>, %arg7: memref<128x128xbf16, #tpu.memory_space<vmem>>, %arg8: memref<128x128xbf16, #tpu.memory_space<vmem>>, %arg9: memref<!tpu.dma_semaphore, #tpu.memory_space<semaphore_mem>>) attributes {dimension_semantics = [#tpu.dimension_semantics<arbitrary>], iteration_bounds = array<i64: 3>, scalar_prefetch = 0 : i64, scratch_operands = 3 : i64, tpu.core_type = #tpu.core_type<tc>, window_params = [{pipeline_mode = #tpu.pipeline_mode<synchronous>, transform_indices = @transform_0, window_bounds = array<i64: 128, 256>}, {}, {transform_indices = @transform_2, window_bounds = array<i64: 1, 256, 128>}, {transform_indices = @transform_3, window_bounds = array<i64: 1, 1, 128>}, {transform_indices = @transform_4, window_bounds = array<i64: 3>}, {pipeline_mode = #tpu.pipeline_mode<synchronous>, transform_indices = @transform_5, window_bounds = array<i64: 128, 128>}]} {
    %c0_i32 = arith.constant 0 : i32
    %0 = arith.cmpi eq, %arg0, %c0_i32 : i32
    %1 = arith.extui %0 : i1 to i32
    %c0_i32_0 = arith.constant 0 : i32
    %2 = arith.cmpi ne, %1, %c0_i32_0 : i32
    scf.if %2 {
      tpu.enqueue_dma source(%arg2 : memref<128x128xbf16, #tpu.memory_space<any>>) target(%arg7 : memref<128x128xbf16, #tpu.memory_space<vmem>>) target_semaphore(%arg9 : memref<!tpu.dma_semaphore, #tpu.memory_space<semaphore_mem>>)
      tpu.wait_dma2 semaphore(%arg9 : memref<!tpu.dma_semaphore, #tpu.memory_space<semaphore_mem>>) src(%arg2 : memref<128x128xbf16, #tpu.memory_space<any>>) dst(%arg7 : memref<128x128xbf16, #tpu.memory_space<vmem>>)
      %c0_14 = arith.constant 0 : index
      %c0_15 = arith.constant 0 : index
      %26 = vector.load %arg1[%c0_14, %c0_15] : memref<128x256xbf16, #tpu.memory_space<vmem>>, vector<128x256xbf16>
      %c0_16 = arith.constant 0 : index
      %c0_17 = arith.constant 0 : index
      %c0_18 = arith.constant 0 : index
      %27 = vector.load %arg3[%c0_16, %c0_17, %c0_18] : memref<1x256x128xbf16, #tpu.memory_space<vmem>>, vector<1x256x128xbf16>
      %28 = vector.shape_cast %27 : vector<1x256x128xbf16> to vector<256x128xbf16>
      %cst_19 = arith.constant dense<0.000000e+00> : vector<128x128xf32>
      %29 = tpu.matmul %26, %28, %cst_19 {dimension_numbers = #tpu.dot_dimension_numbers<[1], [0], [0], [1], [0, 0, 1, 1], [], []>} : vector<128x256xbf16>, vector<256x128xbf16>, vector<128x128xf32> -> vector<128x128xf32>
      %30 = arith.truncf %29 : vector<128x128xf32> to vector<128x128xbf16>
      %c0_20 = arith.constant 0 : index
      %c0_21 = arith.constant 0 : index
      %31 = vector.load %arg8[%c0_20, %c0_21] : memref<128x128xbf16, #tpu.memory_space<vmem>>, vector<128x128xbf16>
      tpu.vector_store %arg8[%c0_20, %c0_21], %30 {strides = array<i32>} : memref<128x128xbf16, #tpu.memory_space<vmem>>, vector<128x128xbf16>,
    } else {
    }
    %c0_i32_1 = arith.constant 0 : i32
    %3 = arith.cmpi sgt, %arg0, %c0_i32_1 : i32
    %4 = arith.extui %3 : i1 to i32
    %c0_i32_2 = arith.constant 0 : i32
    %5 = arith.cmpi ne, %4, %c0_i32_2 : i32
    scf.if %5 {
      %c0_14 = arith.constant 0 : index
      %c0_15 = arith.constant 0 : index
      %26 = vector.load %arg6[%c0_14, %c0_15] : memref<128x128xf32, #tpu.memory_space<vmem>>, vector<128x128xf32>
      %27 = arith.truncf %26 : vector<128x128xf32> to vector<128x128xbf16>
      %c0_16 = arith.constant 0 : index
      %c0_17 = arith.constant 0 : index
      %c0_18 = arith.constant 0 : index
      %28 = vector.load %arg3[%c0_16, %c0_17, %c0_18] : memref<1x256x128xbf16, #tpu.memory_space<vmem>>, vector<1x256x128xbf16>
      %29 = vector.shape_cast %28 : vector<1x256x128xbf16> to vector<256x128xbf16>
      %30 = vector.extract_strided_slice %29 {offsets = [0, 0], sizes = [128, 128], strides = [1, 1]} : vector<256x128xbf16> to vector<128x128xbf16>
      %cst_19 = arith.constant dense<0.000000e+00> : vector<128x128xf32>
      %31 = tpu.matmul %27, %30, %cst_19 {dimension_numbers = #tpu.dot_dimension_numbers<[1], [0], [0], [1], [0, 0, 1, 1], [], []>} : vector<128x128xbf16>, vector<128x128xbf16>, vector<128x128xf32> -> vector<128x128xf32>
      %32 = arith.truncf %31 : vector<128x128xf32> to vector<128x128xbf16>
      %c0_20 = arith.constant 0 : index
      %c0_21 = arith.constant 0 : index
      %33 = vector.load %arg8[%c0_20, %c0_21] : memref<128x128xbf16, #tpu.memory_space<vmem>>, vector<128x128xbf16>
      tpu.vector_store %arg8[%c0_20, %c0_21], %32 {strides = array<i32>} : memref<128x128xbf16, #tpu.memory_space<vmem>>, vector<128x128xbf16>,
    } else {
    }
    %c0 = arith.constant 0 : index
    %c0_3 = arith.constant 0 : index
    %6 = vector.load %arg7[%c0, %c0_3] : memref<128x128xbf16, #tpu.memory_space<vmem>>, vector<128x128xbf16>
    %c0_4 = arith.constant 0 : index
    %c0_5 = arith.constant 0 : index
    %7 = vector.load %arg8[%c0_4, %c0_5] : memref<128x128xbf16, #tpu.memory_space<vmem>>, vector<128x128xbf16>
    %cst = arith.constant dense<0.000000e+00> : vector<128x128xf32>
    %8 = tpu.matmul %6, %7, %cst {dimension_numbers = #tpu.dot_dimension_numbers<[1], [0], [0], [1], [0, 0, 1, 1], [], []>} : vector<128x128xbf16>, vector<128x128xbf16>, vector<128x128xf32> -> vector<128x128xf32>
    %c0_6 = arith.constant 0 : index
    %c0_7 = arith.constant 0 : index
    %c0_8 = arith.constant 0 : index
    %9 = vector.load %arg4[%c0_6, %c0_7, %c0_8] : memref<1x1x128xf32, #tpu.memory_space<vmem>>, vector<1x1x128xf32>
    %10 = vector.shape_cast %9 : vector<1x1x128xf32> to vector<1x128xf32>
    %11 = vector.broadcast %10 : vector<1x128xf32> to vector<128x128xf32>
    %12 = arith.addf %8, %11 : vector<128x128xf32>
    %13 = arith.index_cast %arg0 : i32 to index
    %14 = memref.load %arg5[%13] : memref<3xf32, #tpu.memory_space<smem>>
    %cst_9 = arith.constant 0.000000e+00 : f32
    %15 = vector.broadcast %cst_9 : f32 to vector<128x128xf32>
    %16 = arith.cmpf ogt, %12, %15 : vector<128x128xf32>
    %17 = vector.broadcast %14 : f32 to vector<128x128xf32>
    %18 = arith.mulf %17, %12 : vector<128x128xf32>
    %19 = arith.select %16, %12, %18 : vector<128x128xi1>, vector<128x128xf32>
    %c0_i32_10 = arith.constant 0 : i32
    %20 = arith.cmpi eq, %arg0, %c0_i32_10 : i32
    %21 = arith.extui %20 : i1 to i32
    %c0_i32_11 = arith.constant 0 : i32
    %22 = arith.cmpi ne, %21, %c0_i32_11 : i32
    scf.if %22 {
      %c0_14 = arith.constant 0 : index
      %c0_15 = arith.constant 0 : index
      %26 = vector.load %arg6[%c0_14, %c0_15] : memref<128x128xf32, #tpu.memory_space<vmem>>, vector<128x128xf32>
      tpu.vector_store %arg6[%c0_14, %c0_15], %19 {strides = array<i32>} : memref<128x128xf32, #tpu.memory_space<vmem>>, vector<128x128xf32>,
    } else {
    }
    %c0_i32_12 = arith.constant 0 : i32
    %23 = arith.cmpi sgt, %arg0, %c0_i32_12 : i32
    %24 = arith.extui %23 : i1 to i32
    %c0_i32_13 = arith.constant 0 : i32
    %25 = arith.cmpi ne, %24, %c0_i32_13 : i32
    scf.if %25 {
      %c0_14 = arith.constant 0 : index
      %c0_15 = arith.constant 0 : index
      %26 = vector.load %arg6[%c0_14, %c0_15] : memref<128x128xf32, #tpu.memory_space<vmem>>, vector<128x128xf32>
      %27 = arith.addf %19, %26 : vector<128x128xf32>
      %c0_16 = arith.constant 0 : index
      %c0_17 = arith.constant 0 : index
      %28 = vector.load %arg6[%c0_16, %c0_17] : memref<128x128xf32, #tpu.memory_space<vmem>>, vector<128x128xf32>
      tpu.vector_store %arg6[%c0_16, %c0_17], %27 {strides = array<i32>} : memref<128x128xf32, #tpu.memory_space<vmem>>, vector<128x128xf32>,
    } else {
    }
    return
  }
  func.func @transform_0(%arg0: i32) -> (i32, i32) {
    %c0_i32 = arith.constant 0 : i32
    %c0_i32_0 = arith.constant 0 : i32
    %c0_i32_1 = arith.constant 0 : i32
    return %c0_i32, %c0_i32_0 : i32, i32
  }
  func.func @transform_2(%arg0: i32) -> (i32, i32, i32) {
    %c0_i32 = arith.constant 0 : i32
    %c0_i32_0 = arith.constant 0 : i32
    %c0_i32_1 = arith.constant 0 : i32
    return %arg0, %c0_i32, %c0_i32_0 : i32, i32, i32
  }
  func.func @transform_3(%arg0: i32) -> (i32, i32, i32) {
    %c0_i32 = arith.constant 0 : i32
    %c0_i32_0 = arith.constant 0 : i32
    %c0_i32_1 = arith.constant 0 : i32
    return %arg0, %c0_i32, %c0_i32_0 : i32, i32, i32
  }
  func.func @transform_4(%arg0: i32) -> i32 {
    %c0_i32 = arith.constant 0 : i32
    %c0_i32_0 = arith.constant 0 : i32
    return %c0_i32 : i32
  }
  func.func @transform_5(%arg0: i32) -> (i32, i32) {
    %c0_i32 = arith.constant 0 : i32
    %c0_i32_0 = arith.constant 0 : i32
    %c0_i32_1 = arith.constant 0 : i32
    return %c0_i32, %c0_i32_0 : i32, i32
  }
}

</mosaic_0001>

<bundles_post_ra>
// kernel: tpu_custom_call.1
= control target key start
LH: loop header
LB: loop body
LE: loop exit
PB: predicated region body
PF: predicated region fallthrough
CT: control target
= control target key end

     0   :  { %10 = vsyncpa [#allocation6], 0  ;;  %s2076_s0 = inlined_call_operand.hbm [shape: bf16[128,256], index: 0, kind: input, shape index: {}]   ;;  %s2077_s1 = inlined_call_operand.hbm [shape: bf16[128,128], index: 1, kind: input, shape index: {}]   ;;  %s2078_s2 = inlined_call_operand.hbm [shape: bf16[3,256,128], index: 2, kind: input, shape index: {}]   ;;  %s2079_s3 = inlined_call_operand.vmem [shape: f32[3,1,128], index: 3, kind: input, shape index: {}]   ;;  %s2080_s4 = inlined_call_operand.vmem [shape: f32[3], index: 4, kind: input, shape index: {}]   ;;  %s2081_s5 = inlined_call_operand.hbm [shape: f32[128,128], index: 5, kind: output, shape index: {}]  }
   0x1   :  { %11 = vsyncpa [#allocation10], 0 }
   0x2   :  { %13 = vsyncpa [#allocation10 + $0x1], 0 }
   0x3   :  { %14 = vsyncpa [#allocation8], 0 }
   0x4   :  { %15 = vsyncpa [#allocation7], 0  ;;  %s1753_s18 = smov 0   ;;  %s1755_s19 = smov 0  }
   0x5   :  { %s1757_s20 = smov 0   ;;  %s1759_s21 = smov 0  }
   0x6 LB: > { %s1772_s22 = sadd.s32 4294967295, %s1710_s21   ;;  %p62_p0 = scmp.ne.s32.totalorder %s1702_s19, %s1698_s18  ;;  %s1710_s21 = sphi %s1759_s21, %s2100_s21   ;;  %s1706_s20 = sphi %s1757_s20, %s2099_s20   ;;  %s1702_s19 = sphi %s1755_s19, %s2098_s19   ;;  %s1698_s18 = sphi %s1753_s18, %s2097_s18  }
   0x7   : > { %p2082_p1 = scmp.eq.s32.totalorder %s1772_s22, 0  ;;  %p1149_p2 = scmp.ge.s32.totalorder %s1710_s21, 1 }
   0x8   : > { %p141_p3 = scmp.lt.s32.totalorder %s1710_s21, 4  ;;  %s1712_s25 = smov [#allocation5]  }
   0x9   : > { %p1781_p5 = por %p2082_p1, %p62_p0  ;;  %s153_s26 = sshll.u32 %s1712_s25, 4  ;;  %s154_s26 = int_to_ptr.vmem [resolvable:$true] %s153_s26 }
   0xa   : > { %p1785_p6 = pnand %p1149_p2, %p141_p3  ;;  %s167_s29 = sshll.u32 %s2080_s4, 4  ;;  %s1800_s29 = int_to_ptr.vmem [resolvable:$true] %s167_s29 }
   0xb   : > { %s2085_s23 = scalar_select %p1781_p5, 1, 0 }
   0xc   : > { %s2086_s24 = scalar_select %p1785_p6, 1, 0 }
   0xd   : > { %p1433_p7 = pneg %p1785_p6  ;;  %s1541_s8 = scalar_lea.hbm %s2076_s0, 2048 }
   0xe   : > { %p1542_p9 = scmp.ne.s32.totalorder %s2076_s0, %s1541_s8  ;;  %p1548_p13 = scmp.lt.u32.totalorder %s1541_s8, %s2076_s0 }
   0xf   : > { %p1796_p8 = pnand %p1433_p7, %p2082_p1 }
  0x11   : > { %p1543_p10 = pneg %p1796_p8 }
  0x13   : > { %p1544_p11 = pnand %p1543_p10, %p1542_p9 }
  0x15   : > { %p1545_p12 = pneg %p1544_p11 }
  0x17   : > { %p1550_p0 = pnand %p1548_p13, %p1545_p12 }
  0x19   : > { %1553 = shalt.err (!%p1550_p0)
}
  0x1a   : > { %s1554_s13 = scalar_lea.vmem %s154_s26, 2048  ;;  %p1562_p4 = scmp.lt.s32.totalorder %s154_s26, %s154_s26 }
  0x1b   : > { %p1555_p2 = scmp.ne.s32.totalorder %s154_s26, %s1554_s13  ;;  %p1563_p1 = scmp.lt.s32.totalorder %s1554_s13, %s1554_s13 }
  0x1d   : > { %p1557_p3 = pnand %p1555_p2, %p1543_p10  ;;  %p1564_p5 = por %p1563_p1, %p1562_p4 }
  0x1f   : > { %p1558_p7 = pneg %p1557_p3 }
  0x21   : > { %p1565_p6 = pnand %p1564_p5, %p1558_p7 }
  0x23   : > { %1568 = shalt.err (!%p1565_p6)
}
  0x24   : > { %s1713_s14 = smov 128   ;;  %s1714_s15 = smov 8  }
  0x25   : > { %1436 = dma.hbm_to_vmem [thread:$0]  (!%p1796_p8), %s2076_s0, 2048, %s154_s26, [#allocation6], %s1713_s14, %s1713_s14, %s1714_s15  }
  0x26   : > { %s1569_s18 = scalar_lea.vmem %s1800_s29, 16  ;;  %p1577_p4 = scmp.lt.s32.totalorder %s1800_s29, %s1800_s29 }
  0x27   : > { %p1570_p9 = scmp.ne.s32.totalorder %s1800_s29, %s1569_s18  ;;  %p1578_p5 = scmp.lt.s32.totalorder %s1569_s18, %s1569_s18 }
  0x29   : > { %p1572_p11 = pnand %p1570_p9, %p1543_p10  ;;  %p1579_p6 = por %p1578_p5, %p1577_p4 }
  0x2b   : > { %p1573_p1 = pneg %p1572_p11 }
  0x2d   : > { %p1580_p12 = pnand %p1579_p6, %p1573_p1 }
  0x2f   : > { %1583 = shalt.err (!%p1580_p12)
}
  0x30   : > { %s1715_s25 = smov [#allocation11]   ;;  %s1835_s26 = sadd.s32 1, %s1710_s21  }
  0x31   : > { %1439 = dma.vmem_to_smem (!%p1796_p8), %s1800_s29, 16, %s1715_s25, [#allocation8]  }
  0x32   : > { %s49_s27 = sadd.s32 1, %s1706_s20  ;;  %s46_s28 = ssub.s32 %s1710_s21, %s1835_s26 }
  0x33   : > { %p56_p10 = scmp.ne.s32.totalorder %s1706_s20, %s1702_s19  ;;  %p47_p13 = scmp.eq.s32.totalorder %s46_s28, 0 }
  0x34   : > { %p57_p0 = scmp.eq.s32.totalorder %s1710_s21, 0  ;;  %p1446_p2 = scmp.lt.s32.totalorder %s1710_s21, 3 }
  0x35   : > { %s178_s30 = sand.u32 1, %s1706_s20   ;;  %s1210_s8 = sshll.u32 %s1710_s21, 11 }
  0x36   : > { %s1846_s6 = scalar_select %p47_p13, %s1706_s20, %s49_s27  }
  0x37   : > { %p58_p3 = por %p57_p0, %p56_p10  ;;  %s1153_s7 = sshll.u32 %s178_s30, 7 }
  0x38   : > { %s1852_s11 = scalar_lea.hbm %s2078_s2, %s1210_s8  ;;  %s182_s29 = scalar_lea.vmem [#allocation9], %s1153_s7 }
  0x39   : > { %s189_s12 = sshll.u32 %s182_s29, 4  ;;  %p1854_p8 = pnand %p1446_p2, %p58_p3  ;;  %s1858_s12 = int_to_ptr.vmem [resolvable:$true] %s189_s12 }
  0x3a   : > { %s1860_s21 = scalar_lea.sflag [#allocation10], %s178_s30  ;;  %s1584_s14 = scalar_lea.hbm %s1852_s11, 2048 }
  0x3b   : > { %p1585_p7 = scmp.ne.s32.totalorder %s1852_s11, %s1584_s14  ;;  %p1586_p9 = pneg %p1854_p8 }
  0x3c   : > { %s1589_s17 = scalar_lea.hbm %s2078_s2, 6144  ;;  %p1590_p4 = scmp.lt.u32.totalorder %s1852_s11, %s2078_s2 }
  0x3d   : > { %p1587_p11 = pnand %p1586_p9, %p1585_p7  ;;  %p1591_p5 = scmp.lt.u32.totalorder %s1589_s17, %s1584_s14 }
  0x3e   : > { %p1593_p12 = scmp.lt.u32.totalorder %s1584_s14, %s1852_s11 }
  0x3f   : > { %p1588_p1 = pneg %p1587_p11  ;;  %p1592_p6 = por %p1591_p5, %p1590_p4 }
  0x41   : > { %p1594_p10 = por %p1593_p12, %p1592_p6 }
  0x43   : > { %p1595_p13 = pnand %p1594_p10, %p1588_p1 }
  0x45   : > { %1598 = shalt.err (!%p1595_p13)
}
  0x46   : > { %s1599_s27 = scalar_lea.vmem %s1858_s12, 2048  ;;  %s1716_s28 = smov [#allocation9]  }
  0x47   : > { %p1600_p0 = scmp.ne.s32.totalorder %s1858_s12, %s1599_s27  ;;  %s1604_s30 = sshll.u32 %s1716_s28, 4  ;;  %s1605_s30 = int_to_ptr.vmem [resolvable:$false] %s1604_s30 }
  0x48   : > { %s1606_s7 = scalar_lea.vmem %s1605_s30, 4096  ;;  %p1607_p7 = scmp.lt.s32.totalorder %s1858_s12, %s1605_s30 }
  0x49   : > { %p1602_p2 = pnand %p1600_p0, %p1586_p9  ;;  %p1608_p11 = scmp.lt.s32.totalorder %s1606_s7, %s1599_s27 }
  0x4b   : > { %p1603_p3 = pneg %p1602_p2  ;;  %p1609_p4 = por %p1608_p11, %p1607_p7 }
  0x4d   : > { %p1610_p5 = pnand %p1609_p4, %p1603_p3 }
  0x4f   : > { %1613 = shalt.err (!%p1610_p5)
}
  0x50   : > { %s1717_s8 = smov 64   ;;  %s1718_s9 = smov 4  }
  0x51   : > { %1443 = dma.hbm_to_vmem [thread:$0]  (!%p1854_p8), %s1852_s11, 2048, %s1858_s12, %s1860_s21, %s1717_s8, %s1717_s8, %s1718_s9  }
  0x52   : > { %p2089_p9 = scmp.ne.s32.totalorder %s2086_s24, 0 }
  0x53   : > { %p2090_p1 = scmp.eq.s32.totalorder (!%p2089_p9), %s1772_s22, 0 }
  0x54   : > { %207 = sbr.rel (%p2089_p9) target bundleno = 960 (0x3c0), region = 36 }
  0x5b   : > { %1679 = dma.done.wait (%p2090_p1), [#allocation6], 2048   ;;  %p2091_p6 = pmov %p2090_p1 }
  0x5c   : > { %s213_s10 = sand.u32 1, %s1702_s19   ;;  %p2092_p12 = scmp.ne.s32.totalorder %s2085_s23, 0 }
  0x5d   : > { %1681 = vsyncadd (%p2091_p6), [#allocation6], 4294965248  ;;  %s1158_s29 = sshll.u32 %s213_s10, 7  ;;  %s214_s14 = scalar_lea.sflag [#allocation10], %s213_s10 }
  0x5e   : > { %s1895_s15 = scalar_lea.vmem [#allocation9], %s1158_s29 }
  0x5f   : > { %1683 = dma.done.wait (%p2092_p12), %s214_s14, 2048  }
  0x60   : > { %1685 = vsyncadd (%p2092_p12), %s214_s14, 4294965248  ;;  %p2093_p8 = pmov %p2090_p1 }
  0x61   : > { %p2094_p10 = pmov %p2090_p1 }
  0x62   : > { %1687 = dma.done.wait (%p2093_p8), [#allocation8], 16  }
  0x63   : > { %1689 = vsyncadd (%p2094_p10), [#allocation8], 4294967280 }
  0x64   : > { %226 = sfence }
  0x65   : > { %p245_p13 = scmp.lt.s32.totalorder %s1772_s22, 2  ;;  %p2095_p0 = scmp.ne.s32.totalorder %s1772_s22, 0 }
  0x66   : > { %s1719_s23 = smov (!%p2095_p0), [#allocation2]   ;;  %s1614_s18 = scalar_lea.hbm (!%p2095_p0), %s2077_s1, 1024 }
  0x67   : > { %s1907_s24 = scalar_select %p245_p13, %s1772_s22, 2 }
  0x68   : > { %252 = sbr.rel (%p2095_p0) target bundleno = 399 (0x18f), region = 52  ;;  %s260_s21 = sshll.u32 (!%p2095_p0), %s1719_s23, 4  ;;  %s261_s21 = int_to_ptr.vmem [resolvable:$true] %s260_s21 }
  0x69   : > { %s247_s13 = scalar_lea.vmem %s2079_s3, %s1907_s24  ;;  %p1615_p2 = scmp.ne.s32.totalorder (!%p2095_p0), %s2077_s1, %s1614_s18 }
  0x6a   : > { %p1618_p3 = scmp.lt.u32.totalorder (!%p2095_p0), %s1614_s18, %s2077_s1 }
  0x6c   : > { %p1620_p7 = pnand (!%p2095_p0), %p1618_p3, %p1615_p2 }
  0x6f   : > { %1623 = shalt.err (!%p1620_p7)  }
  0x70   : > { %s1624_s7 = scalar_lea.vmem %s261_s21, 1024  ;;  %p1629_p4 = scmp.lt.s32.totalorder %s261_s21, %s261_s21 }
  0x71   : > { %p1625_p11 = scmp.ne.s32.totalorder %s261_s21, %s1624_s7  ;;  %p1630_p5 = scmp.lt.s32.totalorder %s1624_s7, %s1624_s7 }
  0x73   : > { %p1631_p9 = por %p1630_p5, %p1629_p4 }
  0x75   : > { %p1632_p1 = pnand %p1631_p9, %p1625_p11 }
  0x77   : > { %1635 = shalt.err (!%p1632_p1)  }
  0x78   : > { %263 = dma.hbm_to_vmem [thread:$0]  %s2077_s1, 1024, %s261_s21, [#allocation4] }
  0x79   : > { %1690 = dma.done.wait [#allocation4], 1024 }
  0x7a   : > { %1691 = vsyncadd [#allocation4], 4294966272  ;;  %v1493_v0 = vld [vmem:[%s1895_s15 + $0x40] sm:$0xff]   ;;  %v1495_v2 = vld [vmem:[%s1895_s15 + $0x48] sm:$0xff]  }
  0x7b   : > { %v1494_v1 = vld [vmem:[%s1895_s15] sm:$0xff]   ;;  %1211 = vmatprep.subr.bf16.mxu0 %v1493_v0  ;;  %1371 = vmatprep.subr.bf16.mxu1 %v1493_v0  ;;  %v1496_v3 = vld [vmem:[%s1895_s15 + $0x8] sm:$0xff]   ;;  %v1497_v4 = vld [vmem:[%s1895_s15 + $0x50] sm:$0xff]  }
  0x7c   : > { %1212 = vmatpush3.bf16.msra.mxu0 %v1494_v1  ;;  %1379 = vmatpush3.bf16.msra.mxu1 %v1494_v1  ;;  %v1498_v5 = vld [vmem:[%s1895_s15 + $0x10] sm:$0xff]   ;;  %v1499_v6 = vld [vmem:[%s1895_s15 + $0x58] sm:$0xff]   ;;  %v1501_v8 = vld [vmem:[%s1895_s15 + $0x60] sm:$0xff]  }
  0x7d   : > { %1213 = vmatprep.subr.bf16.mxu0 %v1495_v2  ;;  %1372 = vmatprep.subr.bf16.mxu1 %v1495_v2  ;;  %v1500_v7 = vld [vmem:[%s1895_s15 + $0x18] sm:$0xff]   ;;  %v1502_v9 = vld [vmem:[%s1895_s15 + $0x20] sm:$0xff]   ;;  %v1503_v10 = vld [vmem:[%s1895_s15 + $0x68] sm:$0xff]  }
  0x7e   : > { %v1511_v11 = vld [vmem:[#allocation5 + $0x4] ss:$8 sps:$4 sm:$0xff]   ;;  %v1505_v14 = vld [vmem:[%s1895_s15 + $0x70] sm:$0xff]   ;;  %v1507_v16 = vld [vmem:[%s1895_s15 + $0x78] sm:$0xff]  }
  0x7f   : > { %v1514_v12 = vld [vmem:[#allocation5 + $0x44] ss:$8 sps:$4 sm:$0xff]   ;;  %524 = vmatprep.mubr.bf16.mxu0 %v1511_v11  ;;  %v1506_v15 = vld [vmem:[%s1895_s15 + $0x30] sm:$0xff]   ;;  %v1508_v17 = vld [vmem:[%s1895_s15 + $0x38] sm:$0xff]  }
  0x80   : > { %1214 = vmatpush3.bf16.msra.mxu0 %v1496_v3  ;;  %1380 = vmatpush3.bf16.msra.mxu1 %v1496_v3  ;;  %v1504_v13 = vld [vmem:[%s1895_s15 + $0x28] sm:$0xff]   ;;  %v1515_v20 = vld [vmem:[#allocation5 + $0x14] ss:$8 sps:$4 sm:$0xff]   ;;  %v1519_v22 = vld [vmem:[#allocation5 + $0x10] ss:$8 sps:$4 sm:$0xff]  }
  0x81   : > { %1215 = vmatprep.subr.bf16.mxu0 %v1497_v4  ;;  %1373 = vmatprep.subr.bf16.mxu1 %v1497_v4  ;;  %v1509_v18 = vld [vmem:[#allocation5] ss:$8 sps:$4 sm:$0xff]   ;;  %v1517_v21 = vld [vmem:[#allocation5 + $0x54] ss:$8 sps:$4 sm:$0xff]   ;;  %v1520_v23 = vld [vmem:[#allocation5 + $0x50] ss:$8 sps:$4 sm:$0xff]  }
  0x82   : > { %556 = vmatprep.mubr.bf16.mxu1 %v1514_v12  ;;  %v1512_v19 = vld [vmem:[#allocation5 + $0x40] ss:$8 sps:$4 sm:$0xff]   ;;  %v1521_v24 = vld [vmem:[#allocation5 + $0x24] ss:$8 sps:$4 sm:$0xff]   ;;  %v1527_v28 = vld [vmem:[#allocation5 + $0x34] ss:$8 sps:$4 sm:$0xff]  }
  0x83   : > { %v1523_v25 = vld [vmem:[#allocation5 + $0x64] ss:$8 sps:$4 sm:$0xff]   ;;  %v1525_v26 = vld [vmem:[#allocation5 + $0x20] ss:$8 sps:$4 sm:$0xff]   ;;  %v1529_v29 = vld [vmem:[#allocation5 + $0x74] ss:$8 sps:$4 sm:$0xff]  }
  0x84   : > { %1216 = vmatpush3.bf16.msra.mxu0 %v1498_v5  ;;  %1381 = vmatpush3.bf16.msra.mxu1 %v1498_v5  ;;  %v1526_v27 = vld [vmem:[#allocation5 + $0x60] ss:$8 sps:$4 sm:$0xff]   ;;  %v1531_v30 = vld [vmem:[#allocation5 + $0x30] ss:$8 sps:$4 sm:$0xff]  }
  0x85   : > { %1217 = vmatprep.subr.bf16.mxu0 %v1499_v6  ;;  %1374 = vmatprep.subr.bf16.mxu1 %v1499_v6  ;;  %v1532_v31 = vld [vmem:[#allocation5 + $0x70] ss:$8 sps:$4 sm:$0xff]  }
  0x88   : > { %1218 = vmatpush3.bf16.msra.mxu0 %v1500_v7  ;;  %1382 = vmatpush3.bf16.msra.mxu1 %v1500_v7 }
  0x89   : > { %1219 = vmatprep.subr.bf16.mxu0 %v1501_v8  ;;  %1375 = vmatprep.subr.bf16.mxu1 %v1501_v8 }
  0x8c   : > { %1220 = vmatpush3.bf16.msra.mxu0 %v1502_v9  ;;  %1383 = vmatpush3.bf16.msra.mxu1 %v1502_v9 }
  0x8d   : > { %1221 = vmatprep.subr.bf16.mxu0 %v1503_v10  ;;  %1376 = vmatprep.subr.bf16.mxu1 %v1503_v10 }
  0x90   : > { %1222 = vmatpush3.bf16.msra.mxu0 %v1504_v13  ;;  %1384 = vmatpush3.bf16.msra.mxu1 %v1504_v13 }
  0x91   : > { %1223 = vmatprep.subr.bf16.mxu0 %v1505_v14  ;;  %1377 = vmatprep.subr.bf16.mxu1 %v1505_v14 }
  0x94   : > { %1224 = vmatpush3.bf16.msra.mxu0 %v1506_v15  ;;  %1385 = vmatpush3.bf16.msra.mxu1 %v1506_v15 }
  0x95   : > { %1225 = vmatprep.subr.bf16.mxu0 %v1507_v16  ;;  %1378 = vmatprep.subr.bf16.mxu1 %v1507_v16 }
  0x98   : > { %1226 = vmatpush3.bf16.msra.mxu0 %v1508_v17  ;;  %1386 = vmatpush3.bf16.msra.mxu1 %v1508_v17 }
  0x9b   : > { %525 = vmatmul.mubr.bf16.vlgmr.msra.gmra.mrb[0].mxu0 %v1509_v18  ;;  %557 = vmatmul.mubr.bf16.vlgmr.msra.gmra.mrb[0].mxu1 %v1512_v19 }
  0x9c   : > { %532 = vmatprep.mubr.bf16.mxu0 %v1515_v20  ;;  %564 = vmatprep.mubr.bf16.mxu1 %v1517_v21 }
  0xa3   : > { %533 = vmatmul.mubr.bf16.gmra.mrb[4].mxu0 %v1519_v22  ;;  %565 = vmatmul.mubr.bf16.gmra.mrb[4].mxu1 %v1520_v23 }
  0xa4   : > { %540 = vmatprep.mubr.bf16.mxu0 %v1521_v24  ;;  %572 = vmatprep.mubr.bf16.mxu1 %v1523_v25 }
  0xab   : > { %541 = vmatmul.mubr.bf16.gmra.mrb[8].mxu0 %v1525_v26  ;;  %573 = vmatmul.mubr.bf16.gmra.mrb[8].mxu1 %v1526_v27 }
  0xac   : > { %548 = vmatprep.mubr.bf16.mxu0 %v1527_v28  ;;  %580 = vmatprep.mubr.bf16.mxu1 %v1529_v29 }
  0xb3   : > { %549 = vmatmul.mubr.bf16.gmra.mrb[12].mxu0 %v1531_v30  ;;  %581 = vmatmul.mubr.bf16.gmra.mrb[12].mxu1 %v1532_v31 }
 0x16e   : > { %v1227_v32 = vpop.f32.mrb[0].mxu0  ;;  %v1251_v33 = vpop.f32.mrb[0].mxu1 }
 0x16f   : > { %v1228_v34 = vpop.f32.mrb[1].mxu0  ;;  %v1252_v35 = vpop.f32.mrb[1].mxu1 }
 0x170   : > { %v1229_v36 = vadd.f32 %v1228_v34, %v1227_v32  ;;  %v1253_v37 = vadd.f32 %v1252_v35, %v1251_v33  ;;  %v1230_v38 = vpop.f32.mrb[2].mxu0  ;;  %v1254_v39 = vpop.f32.mrb[2].mxu1 }
 0x171   : > { %v1231_v40 = vpop.f32.mrb[3].mxu0  ;;  %v1255_v41 = vpop.f32.mrb[3].mxu1 }
 0x172   : > { %v1232_v42 = vadd.f32 %v1231_v40, %v1230_v38  ;;  %v1256_v43 = vadd.f32 %v1255_v41, %v1254_v39 }
 0x174   : > { %v589_v44 = vpack.c.bf16 %v1232_v42, %v1229_v36  ;;  %v593_v45 = vpack.c.bf16 %v1256_v43, %v1253_v37 }
 0x176   : > { %597 = vst [vmem:[#allocation3] sm:$0xff] %v589_v44  ;;  %601 = vst [vmem:[#allocation3 + $0x20] sm:$0xff] %v593_v45  ;;  %v1233_v46 = vpop.f32.mrb[4].mxu0  ;;  %v1257_v47 = vpop.f32.mrb[4].mxu1 }
 0x177   : > { %v1234_v48 = vpop.f32.mrb[5].mxu0  ;;  %v1258_v49 = vpop.f32.mrb[5].mxu1 }
 0x178   : > { %v1235_v50 = vadd.f32 %v1234_v48, %v1233_v46  ;;  %v1259_v51 = vadd.f32 %v1258_v49, %v1257_v47  ;;  %v1236_v52 = vpop.f32.mrb[6].mxu0  ;;  %v1260_v53 = vpop.f32.mrb[6].mxu1 }
 0x179   : > { %v1237_v54 = vpop.f32.mrb[7].mxu0  ;;  %v1261_v55 = vpop.f32.mrb[7].mxu1 }
 0x17a   : > { %v1238_v56 = vadd.f32 %v1237_v54, %v1236_v52  ;;  %v1262_v57 = vadd.f32 %v1261_v55, %v1260_v53 }
 0x17c   : > { %v590_v58 = vpack.c.bf16 %v1238_v56, %v1235_v50  ;;  %v594_v59 = vpack.c.bf16 %v1262_v57, %v1259_v51 }
 0x17e   : > { %598 = vst [vmem:[#allocation3 + $0x8] sm:$0xff] %v590_v58  ;;  %602 = vst [vmem:[#allocation3 + $0x28] sm:$0xff] %v594_v59  ;;  %v1239_v60 = vpop.f32.mrb[8].mxu0  ;;  %v1263_v61 = vpop.f32.mrb[8].mxu1 }
 0x17f   : > { %v1240_v62 = vpop.f32.mrb[9].mxu0  ;;  %v1264_v63 = vpop.f32.mrb[9].mxu1 }
 0x180   : > { %v1241_v0 = vadd.f32 %v1240_v62, %v1239_v60  ;;  %v1265_v1 = vadd.f32 %v1264_v63, %v1263_v61  ;;  %v1242_v2 = vpop.f32.mrb[10].mxu0  ;;  %v1266_v3 = vpop.f32.mrb[10].mxu1 }
 0x181   : > { %v1243_v4 = vpop.f32.mrb[11].mxu0  ;;  %v1267_v5 = vpop.f32.mrb[11].mxu1 }
 0x182   : > { %v1244_v6 = vadd.f32 %v1243_v4, %v1242_v2  ;;  %v1268_v7 = vadd.f32 %v1267_v5, %v1266_v3 }
 0x184   : > { %v591_v8 = vpack.c.bf16 %v1244_v6, %v1241_v0  ;;  %v595_v9 = vpack.c.bf16 %v1268_v7, %v1265_v1 }
 0x186   : > { %599 = vst [vmem:[#allocation3 + $0x10] sm:$0xff] %v591_v8  ;;  %603 = vst [vmem:[#allocation3 + $0x30] sm:$0xff] %v595_v9  ;;  %v1245_v10 = vpop.f32.mrb[12].mxu0  ;;  %v1269_v11 = vpop.f32.mrb[12].mxu1 }
 0x187   : > { %v1246_v12 = vpop.f32.mrb[13].mxu0  ;;  %v1270_v13 = vpop.f32.mrb[13].mxu1 }
 0x188   : > { %v1247_v14 = vadd.f32 %v1246_v12, %v1245_v10  ;;  %v1271_v15 = vadd.f32 %v1270_v13, %v1269_v11  ;;  %v1248_v16 = vpop.f32.mrb[14].mxu0  ;;  %v1272_v17 = vpop.f32.mrb[14].mxu1 }
 0x189   : > { %v1249_v18 = vpop.f32.mrb[15].mxu0  ;;  %v1273_v19 = vpop.f32.mrb[15].mxu1 }
 0x18a   : > { %v1250_v20 = vadd.f32 %v1249_v18, %v1248_v16  ;;  %v1274_v21 = vadd.f32 %v1273_v19, %v1272_v17 }
 0x18c   : > { %v592_v22 = vpack.c.bf16 %v1250_v20, %v1247_v14  ;;  %v596_v23 = vpack.c.bf16 %v1274_v21, %v1271_v15 }
 0x18e   : > { %600 = vst [vmem:[#allocation3 + $0x18] sm:$0xff] %v592_v22  ;;  %604 = vst [vmem:[#allocation3 + $0x38] sm:$0xff] %v596_v23 }
 0x18f PF: > { %p1193_p6 = scmp.le.s32.totalorder %s1772_s22, 0 }
 0x190   : > { %v1533_v24 = vld [vmem:[%s1895_s15] sm:$0xff] (!%p1193_p6)   ;;  %v1534_v25 = vld [vmem:[%s1895_s15 + $0x8] sm:$0xff] (!%p1193_p6)   ;;  %v1535_v26 = vld [vmem:[%s1895_s15 + $0x10] sm:$0xff] (!%p1193_p6)  }
 0x191   : > { %608 = sbr.rel (%p1193_p6) target bundleno = 659 (0x293), region = 60  ;;  %1307 = vmatprep.subr.bf16.mxu0 (!%p1193_p6), %v1533_v24  ;;  %1387 = vmatprep.subr.bf16.mxu1 (!%p1193_p6), %v1533_v24  ;;  %v1536_v27 = vld [vmem:[%s1895_s15 + $0x18] sm:$0xff] (!%p1193_p6)   ;;  %v609_v28 = vld [vmem:[#allocation12] sm:$0xff] (!%p1193_p6)  ;;  %v610_v29 = vld [vmem:[#allocation12 + $0x8] sm:$0xff] (!%p1193_p6) }
 0x192   : > { %1308 = vmatpush3.bf16.msra.mxu0 (!%p1193_p6), %v1533_v24  ;;  %1395 = vmatpush3.bf16.msra.mxu1 (!%p1193_p6), %v1533_v24  ;;  %v617_v30 = vld [vmem:[#allocation12 + $0x40] sm:$0xff] (!%p1193_p6)  ;;  %v625_v31 = vpack.c.bf16 (!%p1193_p6), %v610_v29, %v609_v28  ;;  %v618_v32 = vld [vmem:[#allocation12 + $0x48] sm:$0xff] (!%p1193_p6)  ;;  %v1539_v36 = vld [vmem:[%s1895_s15 + $0x30] sm:$0xff] (!%p1193_p6)  }
 0x193   : > { %1309 = vmatprep.subr.bf16.mxu0 (!%p1193_p6), %v1534_v25  ;;  %1388 = vmatprep.subr.bf16.mxu1 (!%p1193_p6), %v1534_v25  ;;  %v629_v33 = vpack.c.bf16 (!%p1193_p6), %v618_v32, %v617_v30  ;;  %v1537_v34 = vld [vmem:[%s1895_s15 + $0x20] sm:$0xff] (!%p1193_p6)   ;;  %v1538_v35 = vld [vmem:[%s1895_s15 + $0x28] sm:$0xff] (!%p1193_p6)   ;;  %v1540_v37 = vld [vmem:[%s1895_s15 + $0x38] sm:$0xff] (!%p1193_p6)  }
 0x194   : > { %1323 = vmatprep.mubr.bf16.mxu0 (!%p1193_p6), %v625_v31  ;;  %v611_v38 = vld [vmem:[#allocation12 + $0x10] sm:$0xff] (!%p1193_p6)  ;;  %v612_v39 = vld [vmem:[#allocation12 + $0x18] sm:$0xff] (!%p1193_p6)  ;;  %v613_v42 = vld [vmem:[#allocation12 + $0x20] sm:$0xff] (!%p1193_p6) }
 0x195   : > { %1331 = vmatprep.mubr.bf16.mxu1 (!%p1193_p6), %v629_v33  ;;  %v619_v40 = vld [vmem:[#allocation12 + $0x50] sm:$0xff] (!%p1193_p6)  ;;  %v620_v41 = vld [vmem:[#allocation12 + $0x58] sm:$0xff] (!%p1193_p6)  ;;  %v614_v43 = vld [vmem:[#allocation12 + $0x28] sm:$0xff] (!%p1193_p6)  ;;  %v626_v46 = vpack.c.bf16 (!%p1193_p6), %v612_v39, %v611_v38 }
 0x196   : > { %1310 = vmatpush3.bf16.msra.mxu0 (!%p1193_p6), %v1534_v25  ;;  %1396 = vmatpush3.bf16.msra.mxu1 (!%p1193_p6), %v1534_v25  ;;  %v621_v44 = vld [vmem:[#allocation12 + $0x60] sm:$0xff] (!%p1193_p6)  ;;  %v622_v45 = vld [vmem:[#allocation12 + $0x68] sm:$0xff] (!%p1193_p6)  ;;  %v630_v47 = vpack.c.bf16 (!%p1193_p6), %v620_v41, %v619_v40  ;;  %v627_v48 = vpack.c.bf16 (!%p1193_p6), %v614_v43, %v613_v42  ;;  %v615_v50 = vld [vmem:[#allocation12 + $0x30] sm:$0xff] (!%p1193_p6) }
 0x197   : > { %1311 = vmatprep.subr.bf16.mxu0 (!%p1193_p6), %v1535_v26  ;;  %1389 = vmatprep.subr.bf16.mxu1 (!%p1193_p6), %v1535_v26  ;;  %v631_v49 = vpack.c.bf16 (!%p1193_p6), %v622_v45, %v621_v44  ;;  %v616_v51 = vld [vmem:[#allocation12 + $0x38] sm:$0xff] (!%p1193_p6)  ;;  %v623_v52 = vld [vmem:[#allocation12 + $0x70] sm:$0xff] (!%p1193_p6) }
 0x198   : > { %v624_v53 = vld [vmem:[#allocation12 + $0x78] sm:$0xff]  ;;  %v628_v54 = vpack.c.bf16 %v616_v51, %v615_v50 }
 0x199   : > { %v632_v55 = vpack.c.bf16 %v624_v53, %v623_v52 }
 0x19a   : > { %1312 = vmatpush3.bf16.msra.mxu0 %v1535_v26  ;;  %1397 = vmatpush3.bf16.msra.mxu1 %v1535_v26 }
 0x19b   : > { %1313 = vmatprep.subr.bf16.mxu0 %v1536_v27  ;;  %1390 = vmatprep.subr.bf16.mxu1 %v1536_v27 }
 0x19e   : > { %1314 = vmatpush3.bf16.msra.mxu0 %v1536_v27  ;;  %1398 = vmatpush3.bf16.msra.mxu1 %v1536_v27 }
 0x19f   : > { %1315 = vmatprep.subr.bf16.mxu0 %v1537_v34  ;;  %1391 = vmatprep.subr.bf16.mxu1 %v1537_v34 }
 0x1a2   : > { %1316 = vmatpush3.bf16.msra.mxu0 %v1537_v34  ;;  %1399 = vmatpush3.bf16.msra.mxu1 %v1537_v34 }
 0x1a3   : > { %1317 = vmatprep.subr.bf16.mxu0 %v1538_v35  ;;  %1392 = vmatprep.subr.bf16.mxu1 %v1538_v35 }
 0x1a6   : > { %1318 = vmatpush3.bf16.msra.mxu0 %v1538_v35  ;;  %1400 = vmatpush3.bf16.msra.mxu1 %v1538_v35 }
 0x1a7   : > { %1319 = vmatprep.subr.bf16.mxu0 %v1539_v36  ;;  %1393 = vmatprep.subr.bf16.mxu1 %v1539_v36 }
 0x1aa   : > { %1320 = vmatpush3.bf16.msra.mxu0 %v1539_v36  ;;  %1401 = vmatpush3.bf16.msra.mxu1 %v1539_v36 }
 0x1ab   : > { %1321 = vmatprep.subr.bf16.mxu0 %v1540_v37  ;;  %1394 = vmatprep.subr.bf16.mxu1 %v1540_v37 }
 0x1ae   : > { %1322 = vmatpush3.bf16.msra.mxu0 %v1540_v37  ;;  %1402 = vmatpush3.bf16.msra.mxu1 %v1540_v37 }
 0x1b1   : > { %1324 = vmatmul.mubr.bf16.vlgmr.msra.gmra.mrb[0].mxu0 %v626_v46  ;;  %1332 = vmatmul.mubr.bf16.vlgmr.msra.gmra.mrb[0].mxu1 %v630_v47 }
 0x1b2   : > { %1327 = vmatprep.mubr.bf16.mxu0 %v627_v48  ;;  %1335 = vmatprep.mubr.bf16.mxu1 %v631_v49 }
 0x1b9   : > { %1328 = vmatmul.mubr.bf16.gmra.mrb[4].mxu0 %v628_v54  ;;  %1336 = vmatmul.mubr.bf16.gmra.mrb[4].mxu1 %v632_v55 }
 0x284   : > { %v1325_v56 = vpop.f32.mrb[0].mxu0  ;;  %v1333_v57 = vpop.f32.mrb[0].mxu1 }
 0x285   : > { %v731_v58 = vpop.f32.mrb[1].mxu0  ;;  %v763_v59 = vpop.f32.mrb[1].mxu1 }
 0x286   : > { %v1326_v60 = vpop.f32.mrb[2].mxu0  ;;  %v1334_v61 = vpop.f32.mrb[2].mxu1 }
 0x287   : > { %v795_v62 = vpack.c.bf16 %v1326_v60, %v1325_v56  ;;  %v799_v63 = vpack.c.bf16 %v1334_v61, %v1333_v57  ;;  %v734_v0 = vpop.f32.mrb[3].mxu0  ;;  %v766_v1 = vpop.f32.mrb[3].mxu1 }
 0x288   : > { %v794_v2 = vpack.c.bf16 %v734_v0, %v731_v58  ;;  %v798_v3 = vpack.c.bf16 %v766_v1, %v763_v59 }
 0x289   : > { %803 = vst [vmem:[#allocation3 + $0x8] sm:$0xff] %v795_v62  ;;  %807 = vst [vmem:[#allocation3 + $0x28] sm:$0xff] %v799_v63 }
 0x28a   : > { %802 = vst [vmem:[#allocation3] sm:$0xff] %v794_v2  ;;  %806 = vst [vmem:[#allocation3 + $0x20] sm:$0xff] %v798_v3 }
 0x28c   : > { %v1329_v4 = vpop.f32.mrb[4].mxu0  ;;  %v1337_v5 = vpop.f32.mrb[4].mxu1 }
 0x28d   : > { %v747_v6 = vpop.f32.mrb[5].mxu0  ;;  %v779_v7 = vpop.f32.mrb[5].mxu1 }
 0x28e   : > { %v1330_v8 = vpop.f32.mrb[6].mxu0  ;;  %v1338_v9 = vpop.f32.mrb[6].mxu1 }
 0x28f   : > { %v797_v10 = vpack.c.bf16 %v1330_v8, %v1329_v4  ;;  %v801_v11 = vpack.c.bf16 %v1338_v9, %v1337_v5  ;;  %v750_v12 = vpop.f32.mrb[7].mxu0  ;;  %v782_v13 = vpop.f32.mrb[7].mxu1 }
 0x290   : > { %v796_v14 = vpack.c.bf16 %v750_v12, %v747_v6  ;;  %v800_v15 = vpack.c.bf16 %v782_v13, %v779_v7 }
 0x291   : > { %805 = vst [vmem:[#allocation3 + $0x18] sm:$0xff] %v797_v10  ;;  %809 = vst [vmem:[#allocation3 + $0x38] sm:$0xff] %v801_v11 }
 0x292   : > { %804 = vst [vmem:[#allocation3 + $0x10] sm:$0xff] %v796_v14  ;;  %808 = vst [vmem:[#allocation3 + $0x30] sm:$0xff] %v800_v15 }
 0x293 PF: > { %v818_v16 = vld [vmem:[#allocation3] sm:$0xff]  ;;  %v819_v17 = vld [vmem:[#allocation3 + $0x8] sm:$0xff]  ;;  %v812_v28 = vld [vmem:[#allocation2 + $0x10] sm:$0xff]  ;;  %s930_s10 = sld [smem:[#allocation11 + %s1772_s22]]  ;;  %p2096_p12 = scmp.ne.s32.totalorder %s1772_s22, 0 }
 0x294   : > { %1339 = vmatprep.subr.bf16.mxu0 %v818_v16  ;;  %1403 = vmatprep.subr.bf16.mxu1 %v818_v16  ;;  %v810_v18 = vld [vmem:[#allocation2] sm:$0xff]  ;;  %v823_v23 = vld [vmem:[#allocation3 + $0x28] sm:$0xff]  ;;  %v816_v29 = vld [vmem:[#allocation2 + $0x30] sm:$0xff] }
 0x295   : > { %1340 = vmatpush3.bf16.msra.mxu0 %v818_v16  ;;  %1411 = vmatpush3.bf16.msra.mxu1 %v818_v16  ;;  %v814_v19 = vld [vmem:[#allocation2 + $0x20] sm:$0xff]  ;;  %v811_v26 = vld [vmem:[#allocation2 + $0x8] sm:$0xff]  ;;  %v813_v30 = vld [vmem:[#allocation2 + $0x18] sm:$0xff] }
 0x296   : > { %1341 = vmatprep.subr.bf16.mxu0 %v819_v17  ;;  %1404 = vmatprep.subr.bf16.mxu1 %v819_v17  ;;  %v822_v22 = vld [vmem:[#allocation3 + $0x20] sm:$0xff]  ;;  %v815_v27 = vld [vmem:[#allocation2 + $0x28] sm:$0xff]  ;;  %v817_v31 = vld [vmem:[#allocation2 + $0x38] sm:$0xff] }
 0x297   : > { %1355 = vmatprep.mubr.bf16.mxu0 %v810_v18  ;;  %1363 = vmatprep.mubr.bf16.mxu1 %v814_v19  ;;  %v1960_v32 = vld [vmem:[%s247_s13] ss:$0 sm:$0xff] }
 0x298   : > { %v821_v21 = vld [vmem:[#allocation3 + $0x18] sm:$0xff] }
 0x299   : > { %v820_v20 = vld [vmem:[#allocation3 + $0x10] sm:$0xff]  ;;  %1342 = vmatpush3.bf16.msra.mxu0 %v819_v17  ;;  %1412 = vmatpush3.bf16.msra.mxu1 %v819_v17  ;;  %v825_v25 = vld [vmem:[#allocation3 + $0x38] sm:$0xff]  ;;  %v1962_v34 = vstv %s930_s10 }
 0x29a   : > { %1343 = vmatprep.subr.bf16.mxu0 %v820_v20  ;;  %1405 = vmatprep.subr.bf16.mxu1 %v820_v20  ;;  %v824_v24 = vld [vmem:[#allocation3 + $0x30] sm:$0xff] }
 0x29d   : > { %1344 = vmatpush3.bf16.msra.mxu0 %v820_v20  ;;  %1413 = vmatpush3.bf16.msra.mxu1 %v820_v20 }
 0x29e   : > { %1345 = vmatprep.subr.bf16.mxu0 %v821_v21  ;;  %1406 = vmatprep.subr.bf16.mxu1 %v821_v21 }
 0x2a1   : > { %1346 = vmatpush3.bf16.msra.mxu0 %v821_v21  ;;  %1414 = vmatpush3.bf16.msra.mxu1 %v821_v21 }
 0x2a2   : > { %1347 = vmatprep.subr.bf16.mxu0 %v822_v22  ;;  %1407 = vmatprep.subr.bf16.mxu1 %v822_v22 }
 0x2a5   : > { %1348 = vmatpush3.bf16.msra.mxu0 %v822_v22  ;;  %1415 = vmatpush3.bf16.msra.mxu1 %v822_v22 }
 0x2a6   : > { %1349 = vmatprep.subr.bf16.mxu0 %v823_v23  ;;  %1408 = vmatprep.subr.bf16.mxu1 %v823_v23 }
 0x2a9   : > { %1350 = vmatpush3.bf16.msra.mxu0 %v823_v23  ;;  %1416 = vmatpush3.bf16.msra.mxu1 %v823_v23 }
 0x2aa   : > { %1351 = vmatprep.subr.bf16.mxu0 %v824_v24  ;;  %1409 = vmatprep.subr.bf16.mxu1 %v824_v24 }
 0x2ad   : > { %1352 = vmatpush3.bf16.msra.mxu0 %v824_v24  ;;  %1417 = vmatpush3.bf16.msra.mxu1 %v824_v24 }
 0x2ae   : > { %1353 = vmatprep.subr.bf16.mxu0 %v825_v25  ;;  %1410 = vmatprep.subr.bf16.mxu1 %v825_v25 }
 0x2b1   : > { %1354 = vmatpush3.bf16.msra.mxu0 %v825_v25  ;;  %1418 = vmatpush3.bf16.msra.mxu1 %v825_v25 }
 0x2b4   : > { %1356 = vmatmul.mubr.bf16.vlgmr.msra.gmra.mrb[0].mxu0 %v811_v26  ;;  %1364 = vmatmul.mubr.bf16.vlgmr.msra.gmra.mrb[0].mxu1 %v815_v27 }
 0x2b5   : > { %1359 = vmatprep.mubr.bf16.mxu0 %v812_v28  ;;  %1367 = vmatprep.mubr.bf16.mxu1 %v816_v29 }
 0x2bc   : > { %1360 = vmatmul.mubr.bf16.gmra.mrb[4].mxu0 %v813_v30  ;;  %1368 = vmatmul.mubr.bf16.gmra.mrb[4].mxu1 %v817_v31 }
 0x387   : > { %v1357_v33 = vpop.f32.mrb[0].mxu0  ;;  %v1365_v35 = vpop.f32.mrb[0].mxu1 }
 0x388   : > { %v876_v36 = vadd.f32 %v1357_v33, %v1960_v32  ;;  %v908_v37 = vadd.f32 %v1365_v35, %v1960_v32  ;;  %v867_v38 = vpop.f32.mrb[1].mxu0  ;;  %v899_v39 = vpop.f32.mrb[1].mxu1 }
 0x389   : > { %v868_v40 = vadd.f32 %v1960_v32, %v867_v38  ;;  %v900_v41 = vadd.f32 %v1960_v32, %v899_v39  ;;  %v1358_v42 = vpop.f32.mrb[2].mxu0  ;;  %v1366_v43 = vpop.f32.mrb[2].mxu1 }
 0x38a   : > { %vm933_vm0 = vcmp.gt.f32.partialorder %v876_v36, 0.0  ;;  %v950_v44 = vmul.f32 %v1962_v34, %v876_v36  ;;  %vm941_vm1 = vcmp.gt.f32.partialorder %v908_v37, 0.0  ;;  %v958_v45 = vmul.f32 %v1962_v34, %v908_v37  ;;  %v870_v46 = vpop.f32.mrb[3].mxu0  ;;  %v902_v47 = vpop.f32.mrb[3].mxu1 }
 0x38b   : > { %vm931_vm2 = vcmp.gt.f32.partialorder %v868_v40, 0.0  ;;  %v948_v48 = vmul.f32 %v1962_v34, %v868_v40  ;;  %vm939_vm3 = vcmp.gt.f32.partialorder %v900_v41, 0.0  ;;  %v956_v49 = vmul.f32 %v1962_v34, %v900_v41 }
 0x38c   : > { %v1972_v50 = vsel %vm933_vm0, %v876_v36, %v950_v44  ;;  %v1974_v51 = vsel %vm941_vm1, %v908_v37, %v958_v45  ;;  %v879_v52 = vadd.f32 %v1358_v42, %v1960_v32  ;;  %v911_v53 = vadd.f32 %v1366_v43, %v1960_v32 }
 0x38d   : > { %v1978_v54 = vsel %vm931_vm2, %v868_v40, %v948_v48  ;;  %v1980_v55 = vsel %vm939_vm3, %v900_v41, %v956_v49  ;;  %v871_v56 = vadd.f32 %v1960_v32, %v870_v46  ;;  %v903_v57 = vadd.f32 %v1960_v32, %v902_v47  ;;  %985 = vst [vmem:[#allocation12 + $0x10] sm:$0xff] (!%p2096_p12), %v1972_v50 }
 0x38e   : > { %vm934_vm4 = vcmp.gt.f32.partialorder %v879_v52, 0.0  ;;  %v951_v58 = vmul.f32 %v1962_v34, %v879_v52  ;;  %vm942_vm5 = vcmp.gt.f32.partialorder %v911_v53, 0.0  ;;  %v959_v59 = vmul.f32 %v1962_v34, %v911_v53  ;;  %983 = vst [vmem:[#allocation12] sm:$0xff] (!%p2096_p12), %v1978_v54  ;;  %991 = vst [vmem:[#allocation12 + $0x40] sm:$0xff] (!%p2096_p12), %v1980_v55 }
 0x38f   : > { %vm932_vm6 = vcmp.gt.f32.partialorder %v871_v56, 0.0  ;;  %v949_v60 = vmul.f32 %v1962_v34, %v871_v56  ;;  %vm940_vm7 = vcmp.gt.f32.partialorder %v903_v57, 0.0  ;;  %v957_v61 = vmul.f32 %v1962_v34, %v903_v57  ;;  %v1361_v62 = vpop.f32.mrb[4].mxu0  ;;  %v1369_v63 = vpop.f32.mrb[4].mxu1  ;;  %993 = vst [vmem:[#allocation12 + $0x50] sm:$0xff] (!%p2096_p12), %v1974_v51 }
 0x390   : > { %v1988_v0 = vsel %vm934_vm4, %v879_v52, %v951_v58  ;;  %v1990_v1 = vsel %vm942_vm5, %v911_v53, %v959_v59  ;;  %v892_v2 = vadd.f32 %v1361_v62, %v1960_v32  ;;  %v924_v3 = vadd.f32 %v1369_v63, %v1960_v32  ;;  %v883_v4 = vpop.f32.mrb[5].mxu0  ;;  %v915_v5 = vpop.f32.mrb[5].mxu1 }
 0x391   : > { %v965_v6 = vsel %vm932_vm6, %v871_v56, %v949_v60  ;;  %v1994_v7 = vsel %vm940_vm7, %v903_v57, %v957_v61  ;;  %v884_v8 = vadd.f32 %v1960_v32, %v883_v4  ;;  %v916_v9 = vadd.f32 %v1960_v32, %v915_v5  ;;  %v1362_v10 = vpop.f32.mrb[6].mxu0  ;;  %v1370_v11 = vpop.f32.mrb[6].mxu1  ;;  %986 = vst [vmem:[#allocation12 + $0x18] sm:$0xff] (!%p2096_p12), %v1988_v0 }
 0x392   : > { %vm937_vm8 = vcmp.gt.f32.partialorder %v892_v2, 0.0  ;;  %v954_v12 = vmul.f32 %v1962_v34, %v892_v2  ;;  %vm945_vm9 = vcmp.gt.f32.partialorder %v924_v3, 0.0  ;;  %v962_v13 = vmul.f32 %v1962_v34, %v924_v3  ;;  %v886_v14 = vpop.f32.mrb[7].mxu0  ;;  %v918_v15 = vpop.f32.mrb[7].mxu1  ;;  %984 = vst [vmem:[#allocation12 + $0x8] sm:$0xff] (!%p2096_p12), %v965_v6  ;;  %992 = vst [vmem:[#allocation12 + $0x48] sm:$0xff] (!%p2096_p12), %v1994_v7 }
 0x393   : > { %vm935_vm10 = vcmp.gt.f32.partialorder %v884_v8, 0.0  ;;  %v952_v16 = vmul.f32 %v1962_v34, %v884_v8  ;;  %vm943_vm11 = vcmp.gt.f32.partialorder %v916_v9, 0.0  ;;  %v960_v17 = vmul.f32 %v1962_v34, %v916_v9  ;;  %982 = sbr.rel (%p2096_p12) target bundleno = 923 (0x39b), region = 64  ;;  %994 = vst [vmem:[#allocation12 + $0x58] sm:$0xff] (!%p2096_p12), %v1990_v1 }
 0x394   : > { %v970_v18 = vsel %vm937_vm8, %v892_v2, %v954_v12  ;;  %v2002_v19 = vsel %vm945_vm9, %v924_v3, %v962_v13  ;;  %v895_v20 = vadd.f32 %v1362_v10, %v1960_v32  ;;  %v927_v21 = vadd.f32 %v1370_v11, %v1960_v32 }
 0x395   : > { %v968_v22 = vsel %vm935_vm10, %v884_v8, %v952_v16  ;;  %v2006_v23 = vsel %vm943_vm11, %v916_v9, %v960_v17  ;;  %v887_v24 = vadd.f32 %v1960_v32, %v886_v14  ;;  %v919_v25 = vadd.f32 %v1960_v32, %v918_v15  ;;  %989 = vst [vmem:[#allocation12 + $0x30] sm:$0xff] (!%p2096_p12), %v970_v18 }
 0x396   : > { %vm938_vm12 = vcmp.gt.f32.partialorder %v895_v20, 0.0  ;;  %v955_v26 = vmul.f32 %v1962_v34, %v895_v20  ;;  %vm946_vm13 = vcmp.gt.f32.partialorder %v927_v21, 0.0  ;;  %v963_v27 = vmul.f32 %v1962_v34, %v927_v21  ;;  %987 = vst [vmem:[#allocation12 + $0x20] sm:$0xff] (!%p2096_p12), %v968_v22  ;;  %995 = vst [vmem:[#allocation12 + $0x60] sm:$0xff] (!%p2096_p12), %v2006_v23 }
 0x397   : > { %vm936_vm14 = vcmp.gt.f32.partialorder %v887_v24, 0.0  ;;  %v953_v28 = vmul.f32 %v1962_v34, %v887_v24  ;;  %vm944_vm15 = vcmp.gt.f32.partialorder %v919_v25, 0.0  ;;  %v961_v29 = vmul.f32 %v1962_v34, %v919_v25  ;;  %997 = vst [vmem:[#allocation12 + $0x70] sm:$0xff] (!%p2096_p12), %v2002_v19 }
 0x398   : > { %v971_v30 = vsel %vm938_vm12, %v895_v20, %v955_v26  ;;  %v2014_v31 = vsel %vm946_vm13, %v927_v21, %v963_v27 }
 0x399   : > { %v969_v33 = vsel %vm936_vm14, %v887_v24, %v953_v28  ;;  %v977_v35 = vsel %vm944_vm15, %v919_v25, %v961_v29  ;;  %990 = vst [vmem:[#allocation12 + $0x38] sm:$0xff] (!%p2096_p12), %v971_v30  ;;  %998 = vst [vmem:[#allocation12 + $0x78] sm:$0xff] (!%p2096_p12), %v2014_v31 }
 0x39a   : > { %988 = vst [vmem:[#allocation12 + $0x28] sm:$0xff] %v969_v33  ;;  %996 = vst [vmem:[#allocation12 + $0x68] sm:$0xff] %v977_v35 }
 0x39b PF: > { %1001 = sbr.rel (%p1193_p6) target bundleno = 934 (0x3a6), region = 68  ;;  %v1002_v32 = vld [vmem:[#allocation12] sm:$0xff] (!%p1193_p6)  ;;  %v1003_v34 = vld [vmem:[#allocation12 + $0x8] sm:$0xff] (!%p1193_p6)  ;;  %v1004_v36 = vld [vmem:[#allocation12 + $0x10] sm:$0xff] (!%p1193_p6) }
 0x39c   : > { %v1018_v37 = vadd.f32 (!%p1193_p6), %v1002_v32, %v1978_v54  ;;  %v1019_v38 = vadd.f32 (!%p1193_p6), %v1003_v34, %v965_v6  ;;  %v1020_v39 = vadd.f32 (!%p1193_p6), %v1004_v36, %v1972_v50  ;;  %v1005_v40 = vld [vmem:[#allocation12 + $0x18] sm:$0xff] (!%p1193_p6)  ;;  %v1010_v48 = vld [vmem:[#allocation12 + $0x40] sm:$0xff] (!%p1193_p6)  ;;  %v1011_v54 = vld [vmem:[#allocation12 + $0x48] sm:$0xff] (!%p1193_p6) }
 0x39d   : > { %v1021_v43 = vadd.f32 (!%p1193_p6), %v1005_v40, %v1988_v0  ;;  %v1008_v46 = vld [vmem:[#allocation12 + $0x30] sm:$0xff] (!%p1193_p6)  ;;  %v1026_v53 = vadd.f32 (!%p1193_p6), %v1010_v48, %v1980_v55  ;;  %v1013_v50 = vld [vmem:[#allocation12 + $0x58] sm:$0xff] (!%p1193_p6)  ;;  %v1027_v57 = vadd.f32 (!%p1193_p6), %v1011_v54, %v1994_v7 }
 0x39e   : > { %v1006_v41 = vld [vmem:[#allocation12 + $0x20] sm:$0xff] (!%p1193_p6)  ;;  %1034 = vst [vmem:[#allocation12] sm:$0xff] (!%p1193_p6), %v1018_v37  ;;  %1035 = vst [vmem:[#allocation12 + $0x8] sm:$0xff] (!%p1193_p6), %v1019_v38  ;;  %v1024_v49 = vadd.f32 (!%p1193_p6), %v1008_v46, %v970_v18  ;;  %v1012_v56 = vld [vmem:[#allocation12 + $0x50] sm:$0xff] (!%p1193_p6)  ;;  %v1029_v59 = vadd.f32 (!%p1193_p6), %v1013_v50, %v1990_v1 }
 0x39f   : > { %v1022_v44 = vadd.f32 (!%p1193_p6), %v1006_v41, %v968_v22  ;;  %1036 = vst [vmem:[#allocation12 + $0x10] sm:$0xff] (!%p1193_p6), %v1020_v39  ;;  %1037 = vst [vmem:[#allocation12 + $0x18] sm:$0xff] (!%p1193_p6), %v1021_v43  ;;  %v1028_v58 = vadd.f32 (!%p1193_p6), %v1012_v56, %v1974_v51  ;;  %v1014_v60 = vld [vmem:[#allocation12 + $0x60] sm:$0xff] (!%p1193_p6)  ;;  %v1016_v62 = vld [vmem:[#allocation12 + $0x70] sm:$0xff] (!%p1193_p6) }
 0x3a0   : > { %1040 = vst [vmem:[#allocation12 + $0x30] sm:$0xff] (!%p1193_p6), %v1024_v49  ;;  %1042 = vst [vmem:[#allocation12 + $0x40] sm:$0xff] (!%p1193_p6), %v1026_v53  ;;  %v1030_v55 = vadd.f32 (!%p1193_p6), %v1014_v60, %v2006_v23  ;;  %v1032_v0 = vadd.f32 (!%p1193_p6), %v1016_v62, %v2002_v19 }
 0x3a1   : > { %v1007_v42 = vld [vmem:[#allocation12 + $0x28] sm:$0xff] (!%p1193_p6)  ;;  %v1009_v47 = vld [vmem:[#allocation12 + $0x38] sm:$0xff] (!%p1193_p6)  ;;  %1038 = vst [vmem:[#allocation12 + $0x20] sm:$0xff] (!%p1193_p6), %v1022_v44  ;;  %1043 = vst [vmem:[#allocation12 + $0x48] sm:$0xff] (!%p1193_p6), %v1027_v57 }
 0x3a2   : > { %v1023_v45 = vadd.f32 %v1007_v42, %v969_v33  ;;  %v1025_v52 = vadd.f32 %v1009_v47, %v971_v30  ;;  %v1015_v61 = vld [vmem:[#allocation12 + $0x68] sm:$0xff]  ;;  %v1017_v2 = vld [vmem:[#allocation12 + $0x78] sm:$0xff]  ;;  %1044 = vst [vmem:[#allocation12 + $0x50] sm:$0xff] %v1028_v58  ;;  %1045 = vst [vmem:[#allocation12 + $0x58] sm:$0xff] %v1029_v59 }
 0x3a3   : > { %v1031_v63 = vadd.f32 %v1015_v61, %v977_v35  ;;  %v1033_v3 = vadd.f32 %v1017_v2, %v2014_v31  ;;  %1046 = vst [vmem:[#allocation12 + $0x60] sm:$0xff] %v1030_v55  ;;  %1048 = vst [vmem:[#allocation12 + $0x70] sm:$0xff] %v1032_v0 }
 0x3a4   : > { %1039 = vst [vmem:[#allocation12 + $0x28] sm:$0xff] %v1023_v45  ;;  %1041 = vst [vmem:[#allocation12 + $0x38] sm:$0xff] %v1025_v52 }
 0x3a5   : > { %1047 = vst [vmem:[#allocation12 + $0x68] sm:$0xff] %v1031_v63  ;;  %1049 = vst [vmem:[#allocation12 + $0x78] sm:$0xff] %v1033_v3 }
 0x3a6 PF: > { %p1449_p8 = scmp.eq.s32.totalorder %s1772_s22, 2  ;;  %s1720_s15 = smov [#allocation12]  }
 0x3a7   : > { %s1056_s24 = sshll.u32 %s1720_s15, 4  ;;  %s1057_s24 = int_to_ptr.vmem [resolvable:$true] %s1056_s24 }
 0x3a8   : > { %s1636_s11 = scalar_lea.vmem %s1057_s24, 2048  ;;  %p1643_p2 = scmp.lt.s32.totalorder %s1057_s24, %s1057_s24 }
 0x3a9   : > { %p1637_p10 = scmp.ne.s32.totalorder %s1057_s24, %s1636_s11  ;;  %p1644_p3 = scmp.lt.s32.totalorder %s1636_s11, %s1636_s11 }
 0x3ab   : > { %p1638_p13 = pnand %p1637_p10, %p1449_p8  ;;  %p1645_p7 = por %p1644_p3, %p1643_p2 }
 0x3ad   : > { %p1639_p0 = pneg %p1638_p13 }
 0x3af   : > { %p1646_p11 = pnand %p1645_p7, %p1639_p0 }
 0x3b1   : > { %1649 = shalt.err (!%p1646_p11)
}
 0x3b2   : > { %s1650_s23 = scalar_lea.hbm %s2081_s5, 2048 }
 0x3b3   : > { %p1651_p4 = scmp.ne.s32.totalorder %s2081_s5, %s1650_s23  ;;  %p1656_p1 = scmp.lt.u32.totalorder %s1650_s23, %s2081_s5 }
 0x3b5   : > { %p1652_p5 = pnand %p1651_p4, %p1449_p8 }
 0x3b7   : > { %p1653_p9 = pneg %p1652_p5 }
 0x3b9   : > { %p1658_p6 = pnand %p1656_p1, %p1653_p9 }
 0x3bb   : > { %1661 = shalt.err (!%p1658_p6)
}
 0x3bc   : > { %s1721_s25 = smov 128   ;;  %s1722_s27 = smov 8  }
 0x3bd   : > { %1430 = dma.vmem_to_hbm [thread:$0]  (%p1449_p8), %s1057_s24, 2048, %s2081_s5, [#allocation7], %s1721_s25, %s1721_s25, %s1722_s27  }
 0x3be   : > { %1693 = dma.done.wait (%p1449_p8), [#allocation7], 2048  }
 0x3bf   : > { %1695 = vsyncadd (%p1449_p8), [#allocation7], 4294965248 }
 0x3c0 PF: > { %p18_p12 = scmp.ge.s32.totalorder %s1835_s26, 5   ;;  %s2097_s18 = smov %s1702_s19 }
 0x3c1   : > { %s2098_s19 = smov %s1706_s20  ;;  %s2099_s20 = smov %s1846_s6 }
 0x3c2   : > { %s2100_s21 = smov %s1835_s26  ;;  %20 = sbr.rel (!%p18_p12) target bundleno = 6 (0x6), region = 106 }
 0x3c9   :  { %1072 = vsyncpa [#allocation6], 1 }
 0x3ca   :  { %1074 = vsyncpa [#allocation6 + $0x1], 1 }
 0x3cb   :  { %1075 = vsyncpa [#allocation10], 1 }
 0x3cc   :  { %1077 = vsyncpa [#allocation10 + $0x1], 1 }
 0x3cd   :  { %1078 = vsyncpa [#allocation7], 1 }
 0x3ce   :  { %1080 = vsyncpa [#allocation7 + $0x1], 1 }
 0x3cf   :  { %1081 = vsyncpa [#allocation8], 1 }
 0x3d0   :  { %1083 = vsyncpa [#allocation8 + $0x1], 1 }
 0x3d1   :  { %1084 = vsyncmov [#allocation4] }
 0x3d4   :  { %s1085_s22 = vpop.sfrf %1084 }
 0x3d5   :  { %p1209_p8 = scmp.ne.s32.totalorder %s1085_s22, 0 }
 0x3d7   :  { %1089 = shalt.err (%p1209_p8)  }

</bundles_post_ra>
